<compile_context>
chip_gen: v5e
topology: v5e:2x2
jax: 0.10.0
libtpu: 0.0.40
codegen_flags: <defaults>
</compile_context>

<pallas_src>
import functools

import jax
import jax.numpy as jnp
import numpy as np
from jax.experimental import pallas as pl
from jax.experimental.pallas import tpu as pltpu


# ---------------------------------------------------------------------------
# Kernel body
# ---------------------------------------------------------------------------
def _assemble_body(tmpl_ref, ctx_neg_ref, ctx_pos_ref, out_ref, *,
                   n_ctx_pos, n_ctx_neg):
    """Write one class-block of the assembled prompt tensor.

    tmpl_ref / out_ref : (2, C_BLK, seq, D)   -- index 0 = negative, 1 = positive
    ctx_*_ref          : (n_ctx_*, D)
    The template already holds the frozen prefix (token 0) and suffix
    (tokens 1+n_ctx ..); only the ctx rows are overwritten.  Stores are
    largest-first: one full unmasked block copy, then two small ctx-row stores.
    """
    c_blk = out_ref.shape[1]
    d = out_ref.shape[3]

    # Full, unmasked copy of the fused prefix/suffix template.
    out_ref[...] = tmpl_ref[...]

    # Overwrite the ctx rows (the only learnable part).
    out_ref[0, :, pl.ds(1, n_ctx_neg), :] = jnp.broadcast_to(
        ctx_neg_ref[...][None], (c_blk, n_ctx_neg, d))
    out_ref[1, :, pl.ds(1, n_ctx_pos), :] = jnp.broadcast_to(
        ctx_pos_ref[...][None], (c_blk, n_ctx_pos, d))


def _assemble_body_with_prefetch(cls_id_ref, *refs, **dims):
    # cls_id_ref only drives the index_maps (scalar prefetch); body ignores it.
    del cls_id_ref
    _assemble_body(*refs, **dims)


# ---------------------------------------------------------------------------
# Init-time helpers
# ---------------------------------------------------------------------------
def build_prompt_template(prefix_neg, suffix_neg, prefix_pos, suffix_pos,
                          n_ctx_neg, n_ctx_pos):
    """Fuse the frozen prefix/suffix buffers into one (2, n_cls, seq, D) template.

    The ctx rows (token offsets 1 .. 1+n_ctx) are a zero "hole" that the kernel
    overwrites every forward call.  Pure init-time work, done once.
    """
    n_cls, _, d = prefix_pos.shape
    dtype = prefix_pos.dtype
    hole_neg = jnp.zeros((n_cls, n_ctx_neg, d), dtype)
    hole_pos = jnp.zeros((n_cls, n_ctx_pos, d), dtype)
    tmpl_neg = jnp.concatenate([prefix_neg, hole_neg, suffix_neg], axis=1)
    tmpl_pos = jnp.concatenate([prefix_pos, hole_pos, suffix_pos], axis=1)
    assert tmpl_neg.shape == tmpl_pos.shape, "pos/neg sequence length mismatch"
    return jnp.stack([tmpl_neg, tmpl_pos], axis=0)  # (2, n_cls, seq, D)


def _vmem_capacity_bytes():
    try:
        return int(pltpu.get_tpu_info().vmem_capacity_bytes)
    except Exception:
        return 64 * 1024 * 1024  # conservative fallback: v7x per-TC VMEM


def _pick_class_block(n_cls, seq, d, itemsize, class_block=None):
    """Largest class block that (a) fits a generation-aware VMEM budget and
    (b) still leaves >=4 grid steps (so megacore split + pipelining engage)."""
    if class_block is not None:
        return int(max(1, min(n_cls, class_block)))
    budget = (_vmem_capacity_bytes() * 3) // 8  # ~48 MiB on 128 MiB chips, ~24 MiB on v7x
    # Per class per step: (2, seq, D) template in + (2, seq, D) out, double-buffered.
    per_class = 2 * seq * d * itemsize * 2 * 2
    fit = max(1, budget // max(1, per_class))
    max_blk = max(1, pl.cdiv(n_cls, 4))         # >=4 grid steps (>=2 per TC on v7x)
    return int(max(1, min(n_cls, fit, max_blk)))


def _maybe_buffered_spec(block_shape, index_map, buffer_count):
    """BlockSpec with deeper pipelining when supported; plain spec otherwise."""
    if buffer_count is not None:
        try:
            return pl.BlockSpec(block_shape, index_map,
                                pipeline_mode=pl.Buffered(buffer_count))
        except Exception:
            pass
    return pl.BlockSpec(block_shape, index_map)


# ---------------------------------------------------------------------------
# Pallas-call wrapper
# ---------------------------------------------------------------------------
def assemble_prompts(template, ctx_neg, ctx_pos, cls_id=None, class_block=None):
    """Assemble the full prompt tensor in a single Pallas call.

    template : (2, n_cls, seq, D) fused frozen prefix/suffix (build_prompt_template)
    ctx_neg  : (n_ctx_neg, D), ctx_pos : (n_ctx_pos, D) learnable contexts.
    Returns (2*N, seq, D) laid out [neg_0..neg_{N-1}, pos_0..pos_{N-1}] with
    N = n_cls (cls_id is None) or len(cls_id).
    """
    _, n_cls, seq, d = template.shape
    n_ctx_neg = ctx_neg.shape[0]
    n_ctx_pos = ctx_pos.shape[0]
    dtype = template.dtype
    itemsize = jnp.dtype(dtype).itemsize
    dims = dict(n_ctx_pos=n_ctx_pos, n_ctx_neg=n_ctx_neg)

    if cls_id is None:
        # --- full-class path: C_BLK classes per grid step ---
        c_blk = _pick_class_block(n_cls, seq, d, itemsize, class_block)
        n_out = n_cls
        kernel = functools.partial(_assemble_body, **dims)
        grid_spec = pltpu.PrefetchScalarGridSpec(
            num_scalar_prefetch=0,
            grid=(pl.cdiv(n_cls, c_blk),),
            in_specs=[
                pl.BlockSpec((2, c_blk, seq, d), lambda i: (0, i, 0, 0)),   # template
                pl.BlockSpec((n_ctx_neg, d), lambda i: (0, 0)),             # ctx_neg
                pl.BlockSpec((n_ctx_pos, d), lambda i: (0, 0)),             # ctx_pos
            ],
            out_specs=pl.BlockSpec((2, c_blk, seq, d), lambda i: (0, i, 0, 0)),
        )
        args = (template, ctx_neg, ctx_pos)
    else:
        # --- cls_id path: gather folded into the index_map via scalar prefetch.
        #     One (2,1,seq,D) template DMA per step; deeper buffering hides it.
        cls_id = jnp.asarray(cls_id, jnp.int32)
        n_out = int(cls_id.shape[0])
        buf = 3 if n_out >= 3 else None
        kernel = functools.partial(_assemble_body_with_prefetch, **dims)
        grid_spec = pltpu.PrefetchScalarGridSpec(
            num_scalar_prefetch=1,
            grid=(n_out,),
            in_specs=[
                _maybe_buffered_spec((2, 1, seq, d),
                                     lambda i, cid: (0, cid[i], 0, 0), buf),
                pl.BlockSpec((n_ctx_neg, d), lambda i, cid: (0, 0)),
                pl.BlockSpec((n_ctx_pos, d), lambda i, cid: (0, 0)),
            ],
            out_specs=pl.BlockSpec((2, 1, seq, d), lambda i, cid: (0, i, 0, 0)),
        )
        args = (cls_id, template, ctx_neg, ctx_pos)

    vmem_cap = _vmem_capacity_bytes()
    bytes_accessed = int(2 * 2 * n_out * seq * d * itemsize
                         + (n_ctx_neg + n_ctx_pos) * d * itemsize)

    out = pl.pallas_call(
        kernel,
        out_shape=jax.ShapeDtypeStruct((2, n_out, seq, d), dtype),
        grid_spec=grid_spec,
        compiler_params=pltpu.CompilerParams(
            dimension_semantics=("parallel",),   # classes independent; 2 TCs split on v7x
            vmem_limit_bytes=int(min((vmem_cap * 3) // 4, 128 * 1024 * 1024)),
        ),
        cost_estimate=pl.CostEstimate(flops=0, transcendentals=0,
                                      bytes_accessed=bytes_accessed),
    )(*args)

    # metadata-only reshape: [neg_0..neg_{N-1}, pos_0..pos_{N-1}]
    return out.reshape(2 * n_out, seq, d)


# ---------------------------------------------------------------------------
# Module forward
# ---------------------------------------------------------------------------
def mlc_prompt_learner_forward(params, cls_id=None, class_block=None):
    """JAX/Pallas equivalent of MLCPromptLearner.forward (generic 2-D ctx)."""
    n_cls = params["token_prefix_pos"].shape[0]
    n_ctx_pos = params["ctx_pos"].shape[0]
    n_ctx_neg = params["ctx_neg"].shape[0]

    template = params.get("prompt_template")
    if template is None:
        template = build_prompt_template(
            params["token_prefix_neg"], params["token_suffix_neg"],
            params["token_prefix_pos"], params["token_suffix_pos"],
            n_ctx_neg, n_ctx_pos)

    if cls_id is not None:
        # TPU has no runtime bounds check on index_map gathers; check if concrete.
        try:
            ids = np.asarray(cls_id)
        except Exception:
            ids = None
        if ids is not None and ids.size and (
                int(ids.min()) < 0 or int(ids.max()) >= n_cls):
            raise ValueError("cls_id contains indices outside [0, n_cls)")

    prompts = assemble_prompts(template, params["ctx_neg"], params["ctx_pos"],
                               cls_id=cls_id, class_block=class_block)

    if cls_id is None:
        tokenized_prompts = params["tokenized_prompts"]
    else:
        cls_idx = jnp.asarray(cls_id)
        tok_neg = params["tokenized_prompts"][:n_cls][cls_idx]
        tok_pos = params["tokenized_prompts"][n_cls:][cls_idx]
        tokenized_prompts = jnp.concatenate([tok_neg, tok_pos], axis=0)

    return prompts, tokenized_prompts


# ---------------------------------------------------------------------------
# Synthetic params + pure-JAX reference
# ---------------------------------------------------------------------------
def make_params(key, n_cls, n_ctx_pos, n_ctx_neg, seq_len, ctx_dim,
                dtype=jnp.float32):
    """Deterministic synthetic parameter/buffer init (mirrors __init__ shapes)."""
    ks = jax.random.split(key, 7)
    n_suf_pos = seq_len - 1 - n_ctx_pos
    n_suf_neg = seq_len - 1 - n_ctx_neg
    params = {
        "ctx_pos": 0.02 * jax.random.normal(ks[0], (n_ctx_pos, ctx_dim), dtype),
        "ctx_neg": 0.02 * jax.random.normal(ks[1], (n_ctx_neg, ctx_dim), dtype),
        "token_prefix_pos": jax.random.normal(ks[2], (n_cls, 1, ctx_dim), dtype),
        "token_prefix_neg": jax.random.normal(ks[3], (n_cls, 1, ctx_dim), dtype),
        "token_suffix_pos": jax.random.normal(ks[4], (n_cls, n_suf_pos, ctx_dim), dtype),
        "token_suffix_neg": jax.random.normal(ks[5], (n_cls, n_suf_neg, ctx_dim), dtype),
        "tokenized_prompts": jax.random.randint(
            ks[6], (2 * n_cls, seq_len), 0, 49408, dtype=jnp.int32),
    }
    # Fuse the frozen prefix/suffix once (init-time work, like register_buffer).
    params["prompt_template"] = build_prompt_template(
        params["token_prefix_neg"], params["token_suffix_neg"],
        params["token_prefix_pos"], params["token_suffix_pos"],
        n_ctx_neg, n_ctx_pos)
    return params


def _reference_forward(params, cls_id=None):
    """Pure-JAX reference matching the PyTorch forward semantics."""
    n_cls = params["token_prefix_pos"].shape[0]
    if cls_id is None:
        prefix_pos, prefix_neg = params["token_prefix_pos"], params["token_prefix_neg"]
        suffix_pos, suffix_neg = params["token_suffix_pos"], params["token_suffix_neg"]
        tokenized = params["tokenized_prompts"]
        n_sel = n_cls
    else:
        idx = np.asarray(cls_id)
        prefix_pos = params["token_prefix_pos"][idx]
        prefix_neg = params["token_prefix_neg"][idx]
        suffix_pos = params["token_suffix_pos"][idx]
        suffix_neg = params["token_suffix_neg"][idx]
        tokenized = jnp.concatenate(
            [params["tokenized_prompts"][:n_cls][idx],
             params["tokenized_prompts"][n_cls:][idx]], axis=0)
        n_sel = len(idx)
    ctx_pos = jnp.broadcast_to(params["ctx_pos"][None],
                               (n_sel,) + params["ctx_pos"].shape)
    ctx_neg = jnp.broadcast_to(params["ctx_neg"][None],
                               (n_sel,) + params["ctx_neg"].shape)
    prompts_pos = jnp.concatenate([prefix_pos, ctx_pos, suffix_pos], axis=1)
    prompts_neg = jnp.concatenate([prefix_neg, ctx_neg, suffix_neg], axis=1)
    prompts = jnp.concatenate([prompts_neg, prompts_pos], axis=0)
    return prompts, tokenized


if __name__ == "__main__":
    # Small shapes consistent with the module (CLIP would be seq=77, D=512).
    n_cls = 5
    n_ctx_pos = 4
    n_ctx_neg = 3
    seq_len = 16
    ctx_dim = 128

    key = jax.random.PRNGKey(0)
    params = make_params(key, n_cls, n_ctx_pos, n_ctx_neg, seq_len, ctx_dim)

    ref_prompts, ref_tok = _reference_forward(params, cls_id=None)

    # --- full-class path, auto class block (c_blk<=cdiv(5,4)=2 -> ragged last) ---
    prompts, tokenized = mlc_prompt_learner_forward(params, cls_id=None)
    prompts = jax.block_until_ready(prompts)
    tokenized = jax.block_until_ready(tokenized)
    assert prompts.shape == (2 * n_cls, seq_len, ctx_dim), prompts.shape
    assert tokenized.shape == (2 * n_cls, seq_len), tokenized.shape
    np.testing.assert_allclose(np.asarray(prompts), np.asarray(ref_prompts),
                               rtol=0, atol=0)
    np.testing.assert_array_equal(np.asarray(tokenized), np.asarray(ref_tok))

    # --- full-class path, forced ragged final block (3 + 2) and single block ---
    for blk in (3, 5):
        p_blk, _ = mlc_prompt_learner_forward(params, cls_id=None, class_block=blk)
        p_blk = jax.block_until_ready(p_blk)
        np.testing.assert_allclose(np.asarray(p_blk), np.asarray(ref_prompts),
                                   rtol=0, atol=0)

    # --- cls_id path (gather via scalar prefetch) ---
    cls_id = [3, 0, 2]
    prompts_s, tokenized_s = mlc_prompt_learner_forward(params, cls_id=cls_id)
    prompts_s = jax.block_until_ready(prompts_s)
    tokenized_s = jax.block_until_ready(tokenized_s)
    ref_prompts_s, ref_tok_s = _reference_forward(params, cls_id=cls_id)
    assert prompts_s.shape == (2 * len(cls_id), seq_len, ctx_dim), prompts_s.shape
    np.testing.assert_allclose(np.asarray(prompts_s), np.asarray(ref_prompts_s),
                               rtol=0, atol=0)
    np.testing.assert_array_equal(np.asarray(tokenized_s), np.asarray(ref_tok_s))

    print("KERNEL_OK")
</pallas_src>

<mosaic_0001>
module attributes {stable_mosaic.version = 11 : i64} {
  func.func @_assemble_body(%arg0: i32, %arg1: memref<2x2x16x128xf32, #tpu.memory_space<vmem>>, %arg2: memref<3x128xf32, #tpu.memory_space<vmem>>, %arg3: memref<4x128xf32, #tpu.memory_space<vmem>>, %arg4: memref<2x2x16x128xf32, #tpu.memory_space<vmem>>) attributes {dimension_semantics = [#tpu.dimension_semantics<parallel>], iteration_bounds = array<i64: 3>, scalar_prefetch = 0 : i64, scratch_operands = 0 : i64, tpu.core_type = #tpu.core_type<tc>, window_params = [{transform_indices = @transform_0, window_bounds = array<i64: 2, 2, 16, 128>}, {pipeline_mode = #tpu.pipeline_mode<synchronous>, transform_indices = @transform_1, window_bounds = array<i64: 3, 128>}, {pipeline_mode = #tpu.pipeline_mode<synchronous>, transform_indices = @transform_2, window_bounds = array<i64: 4, 128>}, {transform_indices = @transform_3, window_bounds = array<i64: 2, 2, 16, 128>}]} {
    %c0 = arith.constant 0 : index
    %c0_0 = arith.constant 0 : index
    %c0_1 = arith.constant 0 : index
    %c0_2 = arith.constant 0 : index
    %0 = vector.load %arg1[%c0, %c0_0, %c0_1, %c0_2] : memref<2x2x16x128xf32, #tpu.memory_space<vmem>>, vector<2x2x16x128xf32>
    %c0_3 = arith.constant 0 : index
    %c0_4 = arith.constant 0 : index
    %c0_5 = arith.constant 0 : index
    %c0_6 = arith.constant 0 : index
    %1 = vector.load %arg4[%c0_3, %c0_4, %c0_5, %c0_6] : memref<2x2x16x128xf32, #tpu.memory_space<vmem>>, vector<2x2x16x128xf32>
    tpu.vector_store %arg4[%c0_3, %c0_4, %c0_5, %c0_6], %0 {strides = array<i32>} : memref<2x2x16x128xf32, #tpu.memory_space<vmem>>, vector<2x2x16x128xf32>,
    %c0_7 = arith.constant 0 : index
    %c0_8 = arith.constant 0 : index
    %2 = vector.load %arg2[%c0_7, %c0_8] : memref<3x128xf32, #tpu.memory_space<vmem>>, vector<3x128xf32>
    %3 = vector.shape_cast %2 : vector<3x128xf32> to vector<1x3x128xf32>
    %4 = vector.shape_cast %3 : vector<1x3x128xf32> to vector<1x3x128xf32>
    %5 = vector.broadcast %4 : vector<1x3x128xf32> to vector<2x3x128xf32>
    %c0_9 = arith.constant 0 : index
    %c0_10 = arith.constant 0 : index
    %c1 = arith.constant 1 : index
    %c0_11 = arith.constant 0 : index
    %6 = vector.load %arg4[%c0_9, %c0_10, %c1, %c0_11] : memref<2x2x16x128xf32, #tpu.memory_space<vmem>>, vector<1x2x3x128xf32>
    %7 = vector.shape_cast %6 : vector<1x2x3x128xf32> to vector<2x3x128xf32>
    %8 = vector.shape_cast %5 : vector<2x3x128xf32> to vector<1x2x3x128xf32>
    tpu.vector_store %arg4[%c0_9, %c0_10, %c1, %c0_11], %8 {strides = array<i32>} : memref<2x2x16x128xf32, #tpu.memory_space<vmem>>, vector<1x2x3x128xf32>,
    %c0_12 = arith.constant 0 : index
    %c0_13 = arith.constant 0 : index
    %9 = vector.load %arg3[%c0_12, %c0_13] : memref<4x128xf32, #tpu.memory_space<vmem>>, vector<4x128xf32>
    %10 = vector.shape_cast %9 : vector<4x128xf32> to vector<1x4x128xf32>
    %11 = vector.shape_cast %10 : vector<1x4x128xf32> to vector<1x4x128xf32>
    %12 = vector.broadcast %11 : vector<1x4x128xf32> to vector<2x4x128xf32>
    %c1_14 = arith.constant 1 : index
    %c0_15 = arith.constant 0 : index
    %c1_16 = arith.constant 1 : index
    %c0_17 = arith.constant 0 : index
    %13 = vector.load %arg4[%c1_14, %c0_15, %c1_16, %c0_17] : memref<2x2x16x128xf32, #tpu.memory_space<vmem>>, vector<1x2x4x128xf32>
    %14 = vector.shape_cast %13 : vector<1x2x4x128xf32> to vector<2x4x128xf32>
    %15 = vector.shape_cast %12 : vector<2x4x128xf32> to vector<1x2x4x128xf32>
    tpu.vector_store %arg4[%c1_14, %c0_15, %c1_16, %c0_17], %15 {strides = array<i32>} : memref<2x2x16x128xf32, #tpu.memory_space<vmem>>, vector<1x2x4x128xf32>,
    return
  }
  func.func @transform_0(%arg0: i32) -> (i32, i32, i32, i32) {
    %c0_i32 = arith.constant 0 : i32
    %c0_i32_0 = arith.constant 0 : i32
    %c0_i32_1 = arith.constant 0 : i32
    %c0_i32_2 = arith.constant 0 : i32
    return %c0_i32, %arg0, %c0_i32_0, %c0_i32_1 : i32, i32, i32, i32
  }
  func.func @transform_1(%arg0: i32) -> (i32, i32) {
    %c0_i32 = arith.constant 0 : i32
    %c0_i32_0 = arith.constant 0 : i32
    %c0_i32_1 = arith.constant 0 : i32
    return %c0_i32, %c0_i32_0 : i32, i32
  }
  func.func @transform_2(%arg0: i32) -> (i32, i32) {
    %c0_i32 = arith.constant 0 : i32
    %c0_i32_0 = arith.constant 0 : i32
    %c0_i32_1 = arith.constant 0 : i32
    return %c0_i32, %c0_i32_0 : i32, i32
  }
  func.func @transform_3(%arg0: i32) -> (i32, i32, i32, i32) {
    %c0_i32 = arith.constant 0 : i32
    %c0_i32_0 = arith.constant 0 : i32
    %c0_i32_1 = arith.constant 0 : i32
    %c0_i32_2 = arith.constant 0 : i32
    return %c0_i32, %arg0, %c0_i32_0, %c0_i32_1 : i32, i32, i32, i32
  }
}

</mosaic_0001>

<bundles_post_ra>
// kernel: tpu_custom_call.1
= control target key start
LH: loop header
LB: loop body
LE: loop exit
PB: predicated region body
PF: predicated region fallthrough
CT: control target
= control target key end

     0   :  { %s859_s0 = inlined_call_operand.hbm [shape: f32[2,5,16,128], index: 0, kind: input, shape index: {}]   ;;  %s860_s1 = inlined_call_operand.hbm [shape: f32[3,128], index: 1, kind: input, shape index: {}]   ;;  %s861_s2 = inlined_call_operand.hbm [shape: f32[4,128], index: 2, kind: input, shape index: {}]   ;;  %s862_s3 = inlined_call_operand.hbm [shape: f32[2,5,16,128], index: 3, kind: output, shape index: {}]  }
   0x1   :  { %863 = sst [smem:[#allocation16_spill]] %s860_s1 }
   0x2   :  { %864 = sst [smem:[#allocation17_spill]] %s861_s2 }
   0x3   :  { %8 = vsyncpa [#allocation3], 0 }
   0x4   :  { %10 = vsyncpa [#allocation3 + $0x1], 0 }
   0x5   :  { %11 = vsyncpa [#allocation6], 0 }
   0x6   :  { %12 = vsyncpa [#allocation4], 0 }
   0x7   :  { %14 = vsyncpa [#allocation4 + $0x1], 0  ;;  %s691_s12 = smov 0   ;;  %s693_s13 = smov 0  }
   0x8   :  { %s695_s14 = smov 0   ;;  %s697_s15 = smov 0  }
   0x9 LB: > { %s712_s16 = sadd.s32 4294967295, %s656_s15   ;;  %s433_s17 = sadd.s32 4294967294, %s656_s15   ;;  %s656_s15 = sphi %s697_s15, %s877_s15   ;;  %s652_s14 = sphi %s695_s14, %s876_s14   ;;  %s648_s13 = sphi %s693_s13, %s875_s13   ;;  %s644_s12 = sphi %s691_s12, %s874_s12  }
   0xa   : > { %s716_s18 = sadd.s32 1, %s656_s15   ;;  %s27_s19 = sadd.s32 1, %s652_s14 }
   0xb   : > { %s24_s20 = ssub.s32 %s656_s15, %s716_s18  ;;  %p34_p0 = scmp.ne.s32.totalorder %s652_s14, %s648_s13 }
   0xc   : > { %p25_p1 = scmp.eq.s32.totalorder %s24_s20, 0  ;;  %p35_p2 = scmp.eq.s32.totalorder %s656_s15, 0 }
   0xd   : > { %p40_p3 = scmp.ne.s32.totalorder %s648_s13, %s644_s12  ;;  %p41_p4 = scmp.eq.s32.totalorder %s712_s16, 0 }
   0xe   : > { %s728_s21 = scalar_select %p25_p1, %s652_s14, %s27_s19  }
   0xf   : > { %p730_p5 = por %p35_p2, %p34_p0  ;;  %p736_p6 = por %p41_p4, %p40_p3 }
  0x10   : > { %p106_p7 = scmp.eq.s32.totalorder %s712_s16, 2  ;;  %p112_p8 = scmp.eq.s32.totalorder %s433_s17, 2 }
  0x11   : > { %p434_p9 = scmp.ge.s32.totalorder %s656_s15, 1  ;;  %p119_p10 = scmp.lt.s32.totalorder %s656_s15, 4 }
  0x12   : > { %p743_p11 = por %p106_p7, %p34_p0  ;;  %p747_p12 = por %p112_p8, %p40_p3 }
  0x13   : > { %p751_p13 = pnand %p434_p9, %p119_p10  ;;  %s870_s1 = sld [smem:[#allocation16_spill]] }
  0x14   : > { %s658_s30 = smov [#allocation5]   ;;  %s871_s2 = sld [smem:[#allocation17_spill]] }
  0x15   : > { %p493_p1 = pneg %p751_p13  ;;  %s133_s4 = sshll.u32 %s658_s30, 4  ;;  %s134_s4 = int_to_ptr.vmem [resolvable:$true] %s133_s4 }
  0x16   : > { %s659_s8 = smov [#allocation7]   ;;  %p437_p2 = scmp.ge.s32.totalorder %s656_s15, 3 }
  0x17   : > { %p494_p0 = pnand %p493_p1, %p41_p4  ;;  %s145_s9 = sshll.u32 %s659_s8, 4  ;;  %s146_s9 = int_to_ptr.vmem [resolvable:$true] %s145_s9 }
  0x18   : > { %152 = sbr.rel (%p437_p2) target bundleno = 54 (0x36), region = 24 }
  0x19   : > { %s131_s29 = sshll.u32 %s870_s1, 4  ;;  %s132_s29 = int_to_ptr.hbm [resolvable:$true] %s131_s29 }
  0x1a   : > { %s143_s7 = sshll.u32 %s871_s2, 4  ;;  %s144_s7 = int_to_ptr.hbm [resolvable:$true] %s143_s7 }
  0x1b   : > { %496 = dma.hbm_to_vmem [thread:$0]  (!%p494_p0), %s132_s29, 64, %s134_s4, [#allocation6]  }
  0x1c   : > { %499 = dma.hbm_to_vmem [thread:$0]  (!%p494_p0), %s144_s7, 64, %s146_s9, [#allocation6]  }
  0x1d   : > { %155 = sbr.rel (!%p730_p5) target bundleno = 54 (0x36), region = 28 }
  0x22   : > { %s156_s10 = sand.u32 1, %s652_s14   ;;  %s439_s11 = sshll.u32 %s656_s15, 1 }
  0x23   : > { %s438_s17 = sshll.u32 %s156_s10, 6  ;;  %s162_s19 = ssub.s32 5, %s439_s11 }
  0x24   : > { %p163_p3 = scmp.lt.s32.totalorder %s162_s19, 2  ;;  %s773_s29 = scalar_lea.sflag [#allocation3], %s156_s10 }
  0x25   : > { %s160_s30 = scalar_lea.vmem [#allocation2], %s438_s17 }
  0x26   : > { %s879_s19 = smov (!%p163_p3, %s162_s19), 2 }
  0x27   : > { %s471_s20 = sshll.u32 %s879_s19, 5 }
  0x28   : > { %s167_s27 = ssub.s32 64, %s471_s20 }
  0x29   : > { %s168_s28 = sshll.u32 %s167_s27, 4 }
  0x2a   : > { %169 = vsyncadd %s773_s29, %s168_s28  ;;  %p776_p5 = scmp.ne.s32.totalorder %s471_s20, 0  ;;  %s473_s4 = sshll.u32 %s656_s15, 5 }
  0x2b   : > { %s173_s7 = scalar_lea.hbm %s859_s0, %s473_s4  ;;  %s445_s8 = sshll.u32 %s879_s19, 1 }
  0x2c   : > { %s181_s9 = sld [smem:[#allocation0]]   ;;  %s189_s11 = sshll.u32 %s173_s7, 4  ;;  %s190_s11 = int_to_ptr.hbm [resolvable:$true] %s189_s11 }
  0x2d   : > { %s191_s10 = sshll.u32 %s160_s30, 4  ;;  %s476_s17 = sshll.u32 %s879_s19, 9  ;;  %s192_s10 = int_to_ptr.vmem [resolvable:$true] %s191_s10 }
  0x2e   : > { %s660_s27 = smov 1280   ;;  %s661_s20 = smov 512  }
  0x2f   : > { %198 = sst [smem:[#allocation10]] %s660_s27  ;;  %s662_s2 = smov 128  }
  0x30   : > { %200 = sst [smem:[#allocation10 + $0x1]] %s661_s20  ;;  %s663_s4 = smov 8  }
  0x31   : > { %202 = sst [smem:[#allocation10 + $0x2]] %s445_s8  ;;  %s664_s5 = smov [#allocation9]  }
  0x32   : > { %s448_s28 = sshll.u32 %s181_s9, 26  ;;  %204 = sst [smem:[#allocation10 + $0x3]] %s662_s2 }
  0x33   : > { %s449_s1 = sadd.s32 134217728, %s448_s28  ;;  %206 = sst [smem:[#allocation10 + $0x4]] %s662_s2 }
  0x34   : > { %208 = sst [smem:[#allocation10 + $0x5]] %s663_s4 }
  0x35   : > { %210 = dma.general (%p776_p5), %s190_s11, %s476_s17, %s192_s10, %s773_s29, %s664_s5, [#allocation10], %s449_s1, 0  }
  0x36 PF: > { %216 = sbr.rel (%p751_p13) target bundleno = 94 (0x5e), region = 32  ;;  %s792_s19 = sand.u32 (!%p751_p13), 1, %s648_s13  }
  0x37   : > { %s452_s30 = sshll.u32 (!%p751_p13), %s792_s19, 6  ;;  %s219_s6 = scalar_lea.sflag (!%p751_p13), [#allocation3], %s792_s19 }
  0x38   : > { %s222_s7 = scalar_lea.vmem (!%p751_p13), [#allocation2], %s452_s30 }
  0x3b   : > { %631 = dma.done.wait (%p736_p6), %s219_s6, 1024  }
  0x3c   : > { %633 = vsyncadd (%p736_p6), %s219_s6, 4294966272 }
  0x3d   : > { %635 = dma.done.wait (%p41_p4), [#allocation6], 128  }
  0x3e   : > { %637 = vsyncadd (%p41_p4), [#allocation6], 4294967168  ;;  %v268_v0 = vld [vmem:[%s222_s7] sm:$0xff]  ;;  %v270_v1 = vld [vmem:[%s222_s7 + $0x10] sm:$0xff]  ;;  %s804_s1 = scalar_lea.vmem [#allocation8], %s452_s30  ;;  %s292_s2 = scalar_lea.sflag [#allocation4], %s792_s19 }
  0x3f   : > { %v272_v2 = vld [vmem:[%s222_s7 + $0x20] sm:$0xff]  ;;  %276 = vst [vmem:[%s804_s1] sm:$0xff] %v268_v0  ;;  %v274_v3 = vld [vmem:[%s222_s7 + $0x30] sm:$0xff]  ;;  %v269_v4 = vld [vmem:[%s222_s7 + $0x8] sm:$0xff] }
  0x40   : > { %278 = vst [vmem:[%s804_s1 + $0x10] sm:$0xff] %v270_v1  ;;  %v271_v5 = vld [vmem:[%s222_s7 + $0x18] sm:$0xff]  ;;  %v273_v6 = vld [vmem:[%s222_s7 + $0x28] sm:$0xff]  ;;  %v284_v8 = vld [vmem:[#allocation5] sm:$0x7] }
  0x41   : > { %280 = vst [vmem:[%s804_s1 + $0x20] sm:$0xff] %v272_v2  ;;  %v275_v7 = vld [vmem:[%s222_s7 + $0x38] sm:$0xff]  ;;  %v287_v9 = vld [vmem:[#allocation7] sm:$0xf] }
  0x42   : > { %282 = vst [vmem:[%s804_s1 + $0x30] sm:$0xff] %v274_v3 }
  0x43   : > { %277 = vst [vmem:[%s804_s1 + $0x8] sm:$0xff] %v269_v4 }
  0x44   : > { %279 = vst [vmem:[%s804_s1 + $0x18] sm:$0xff] %v271_v5 }
  0x45   : > { %281 = vst [vmem:[%s804_s1 + $0x28] sm:$0xff] %v273_v6 }
  0x46   : > { %283 = vst [vmem:[%s804_s1 + $0x38] sm:$0xff] %v275_v7  ;;  %298 = sbr.rel (!%p743_p11) target bundleno = 94 (0x5e), region = 48 }
  0x47   : > { %285 = vst [vmem:[%s804_s1 + $0x1] sm:$0x7] %v284_v8 }
  0x48   : > { %286 = vst [vmem:[%s804_s1 + $0x11] sm:$0x7] %v284_v8 }
  0x49   : > { %456 = vst [vmem:[%s804_s1 + $0x21] sm:$0xf] %v287_v9 }
  0x4a   : > { %457 = vst [vmem:[%s804_s1 + $0x31] sm:$0xf] %v287_v9 }
  0x4b   : > { %s459_s23 = sshll.u32 %s712_s16, 1 }
  0x4c   : > { %s300_s26 = ssub.s32 5, %s459_s23 }
  0x4d   : > { %p301_p4 = scmp.lt.s32.totalorder %s300_s26, 2 }
  0x4f   : > { %s881_s26 = smov (!%p301_p4, %s300_s26), 2 }
  0x50   : > { %s477_s29 = sshll.u32 %s881_s26, 5 }
  0x51   : > { %s305_s22 = ssub.s32 64, %s477_s29 }
  0x52   : > { %s306_s8 = sshll.u32 %s305_s22, 4 }
  0x53   : > { %307 = vsyncadd %s292_s2, %s306_s8  ;;  %p827_p6 = scmp.ne.s32.totalorder %s477_s29, 0  ;;  %s479_s9 = sshll.u32 %s712_s16, 5 }
  0x54   : > { %s311_s17 = scalar_lea.hbm %s862_s3, %s479_s9  ;;  %s465_s27 = sshll.u32 %s881_s26, 1 }
  0x55   : > { %s325_s20 = sshll.u32 %s804_s1, 4  ;;  %s327_s28 = sshll.u32 %s311_s17, 4  ;;  %s326_s20 = int_to_ptr.vmem [resolvable:$true] %s325_s20  ;;  %s328_s28 = int_to_ptr.hbm [resolvable:$true] %s327_s28 }
  0x56   : > { %s482_s4 = sshll.u32 %s881_s26, 9  ;;  %s665_s5 = smov 512  }
  0x57   : > { %334 = sst [smem:[#allocation12]] %s665_s5  ;;  %s666_s30 = smov 1280  }
  0x58   : > { %336 = sst [smem:[#allocation12 + $0x1]] %s666_s30  ;;  %s667_s6 = smov 128  }
  0x59   : > { %338 = sst [smem:[#allocation12 + $0x2]] %s465_s27  ;;  %s668_s16 = smov 8  }
  0x5a   : > { %340 = sst [smem:[#allocation12 + $0x3]] %s667_s6  ;;  %s669_s7 = smov [#allocation11]  }
  0x5b   : > { %342 = sst [smem:[#allocation12 + $0x4]] %s667_s6  ;;  %s670_s23 = smov 0  }
  0x5c   : > { %344 = sst [smem:[#allocation12 + $0x5]] %s668_s16 }
  0x5d   : > { %346 = dma.general (%p827_p6), %s326_s20, %s482_s4, %s328_s28, %s292_s2, %s669_s7, [#allocation12], %s670_s23, 0  }
  0x5e PF: > { %p508_p7 = scmp.ge.s32.totalorder %s656_s15, 2  ;;  %s355_s1 = sand.u32 1, %s644_s12  }
  0x5f   : > { %s356_s26 = scalar_lea.sflag [#allocation4], %s355_s1 }
  0x60   : > { %p501_p8 = pnand %p508_p7, %p747_p12 }
  0x62   : > { %p502_p9 = pneg %p501_p8 }
  0x64   : > { %639 = dma.done.wait (%p502_p9), %s356_s26, 1024  }
  0x65   : > { %641 = vsyncadd (%p502_p9), %s356_s26, 4294966272  ;;  %p17_p10 = scmp.ge.s32.totalorder %s716_s18, 5   ;;  %s874_s12 = smov %s648_s13 }
  0x66   : > { %s875_s13 = smov %s652_s14  ;;  %s876_s14 = smov %s728_s21 }
  0x67   : > { %s877_s15 = smov %s716_s18  ;;  %19 = sbr.rel (!%p17_p10) target bundleno = 9 (0x9), region = 96 }
  0x6c   :  { %362 = vsyncpa [#allocation3], 1 }
  0x6d   :  { %364 = vsyncpa [#allocation3 + $0x1], 1 }
  0x6e   :  { %365 = vsyncpa [#allocation6], 1 }
  0x6f   :  { %366 = vsyncpa [#allocation4], 1 }
  0x70   :  { %368 = vsyncpa [#allocation4 + $0x1], 1 }

</bundles_post_ra>
